<compile_context>
chip_gen: v6e
topology: v6e:2x2x1
jax: 0.10.0
libtpu: 0.0.40
codegen_flags: <defaults>
</compile_context>

<pallas_src>
import functools

import jax
import jax.numpy as jnp
from jax.experimental import pallas as pl
from jax.experimental.pallas import tpu as pltpu


def _dma_copy_kernel(chunk_rows, x_hbm, o_hbm, sem):
    """Per grid step: one HBM->HBM DMA covering rows [i*chunk, (i+1)*chunk)."""
    i = pl.program_id(0)
    start = pl.multiple_of(i * chunk_rows, chunk_rows)
    cp = pltpu.make_async_copy(
        x_hbm.at[pl.ds(start, chunk_rows)],
        o_hbm.at[pl.ds(start, chunk_rows)],
        sem,
    )
    cp.start()
    cp.wait()


def _dma_copy(x):
    """Materialize a fresh copy of `x` via pure HBM->HBM DMA (no VMEM staging)."""
    orig_shape = x.shape
    if x.ndim == 0:
        x = x.reshape(1)

    rows = x.shape[0]
    # 2-way split (each half is still contiguous) lets v7x's two TensorCores
    # issue independent DMA descriptors; neutral on single-core v5e/v6e.
    num_splits = 2 if (rows >= 2 and rows % 2 == 0) else 1
    chunk_rows = rows // num_splits

    nbytes = x.size * jnp.dtype(x.dtype).itemsize

    out = pl.pallas_call(
        functools.partial(_dma_copy_kernel, chunk_rows),
        out_shape=jax.ShapeDtypeStruct(x.shape, x.dtype),
        grid_spec=pltpu.PrefetchScalarGridSpec(
            num_scalar_prefetch=0,
            grid=(num_splits,),
            in_specs=[pl.BlockSpec(memory_space=pl.ANY)],
            out_specs=pl.BlockSpec(memory_space=pl.ANY),
            scratch_shapes=[pltpu.SemaphoreType.DMA(())],
        ),
        compiler_params=pltpu.CompilerParams(
            dimension_semantics=("parallel",),
            has_side_effects=True,
        ),
        cost_estimate=pl.CostEstimate(
            flops=0, transcendentals=0, bytes_accessed=2 * nbytes
        ),
    )(x)
    return out.reshape(orig_shape)


def identity_forward(x, edge_index=None, edge_weight=None, *, materialize=False):
    """Pallas implementation of Identity.forward: returns x unchanged.

    Default (materialize=False): zero-copy — no kernel launch, no HBM traffic.
    materialize=True: returns a freshly materialized copy produced by a single
    HBM->HBM async DMA (split across TensorCores on v7x when possible).
    """
    if not materialize:
        # Highest-value optimization: identity is a no-op; skip the kernel.
        return x
    return _dma_copy(x)


class IdentityPallas:
    """Mirror of the PyTorch Identity module (no parameters)."""

    def __init__(self, in_dim, out_dim):
        assert in_dim == out_dim
        self.dim = in_dim

    def reset_parameters(self):
        pass

    def __call__(self, x, edge_index, edge_weight=None):
        # Matches `return x` exactly: no copy, no HBM round trip.
        return identity_forward(x, edge_index, edge_weight)


if __name__ == "__main__":
    key = jax.random.PRNGKey(0)
    k_x, k_e, k_w, k_y = jax.random.split(key, 4)

    num_nodes, hidden = 8, 32
    num_edges = 16

    x = jax.random.normal(k_x, (num_nodes, hidden), dtype=jnp.float32)
    edge_index = jax.random.randint(k_e, (2, num_edges), 0, num_nodes, dtype=jnp.int32)
    edge_weight = jax.random.uniform(k_w, (num_edges,), dtype=jnp.float32)

    mod = IdentityPallas(hidden, hidden)

    # Default forward: zero-copy identity (the production path).
    out_fast = jax.block_until_ready(mod(x, edge_index, edge_weight))
    assert out_fast.shape == x.shape and out_fast.dtype == x.dtype
    assert bool(jnp.array_equal(out_fast, x))

    # Materialized path: 2-way split HBM->HBM DMA (rows=8 divides evenly).
    out_copy = jax.block_until_ready(
        identity_forward(x, edge_index, edge_weight, materialize=True)
    )
    assert out_copy.shape == x.shape and out_copy.dtype == x.dtype
    assert bool(jnp.array_equal(out_copy, x))

    # Odd leading dim / non-128-multiple element count: single-DMA path.
    y = jax.random.normal(k_y, (7, 33), dtype=jnp.float32)
    out_y = jax.block_until_ready(identity_forward(y, None, materialize=True))
    assert out_y.shape == y.shape and out_y.dtype == y.dtype
    assert bool(jnp.array_equal(out_y, y))

    print("KERNEL_OK")
</pallas_src>

<mosaic_0001>
module attributes {stable_mosaic.version = 11 : i64} {
  func.func @_dma_copy_kernel(%arg0: i32, %arg1: memref<8x32xf32, #tpu.memory_space<any>>, %arg2: memref<8x32xf32, #tpu.memory_space<any>>, %arg3: memref<!tpu.dma_semaphore, #tpu.memory_space<semaphore_mem>>) attributes {dimension_semantics = [#tpu.dimension_semantics<parallel>], iteration_bounds = array<i64: 2>, scalar_prefetch = 0 : i64, scratch_operands = 1 : i64, tpu.core_type = #tpu.core_type<tc>, window_params = [{}, {}]} {
    %c4_i32 = arith.constant 4 : i32
    %0 = arith.muli %arg0, %c4_i32 : i32
    %1 = tpu.assume_multiple %0, 4 : i32
    %c0_i32 = arith.constant 0 : i32
    %2 = tpu.memref_slice %arg1[%1, %c0_i32] : memref<8x32xf32, #tpu.memory_space<any>> -> memref<4x32xf32, #tpu.memory_space<any>>
    %c0_i32_0 = arith.constant 0 : i32
    %3 = tpu.memref_slice %arg2[%1, %c0_i32_0] : memref<8x32xf32, #tpu.memory_space<any>> -> memref<4x32xf32, #tpu.memory_space<any>>
    tpu.enqueue_dma source(%2 : memref<4x32xf32, #tpu.memory_space<any>>) target(%3 : memref<4x32xf32, #tpu.memory_space<any>>) target_semaphore(%arg3 : memref<!tpu.dma_semaphore, #tpu.memory_space<semaphore_mem>>)
    %c0_i32_1 = arith.constant 0 : i32
    %4 = tpu.memref_slice %arg1[%1, %c0_i32_1] : memref<8x32xf32, #tpu.memory_space<any>> -> memref<4x32xf32, #tpu.memory_space<any>>
    %c0_i32_2 = arith.constant 0 : i32
    %5 = tpu.memref_slice %arg2[%1, %c0_i32_2] : memref<8x32xf32, #tpu.memory_space<any>> -> memref<4x32xf32, #tpu.memory_space<any>>
    tpu.wait_dma2 semaphore(%arg3 : memref<!tpu.dma_semaphore, #tpu.memory_space<semaphore_mem>>) src(%4 : memref<4x32xf32, #tpu.memory_space<any>>) dst(%5 : memref<4x32xf32, #tpu.memory_space<any>>)
    return
  }
}

</mosaic_0001>

<bundles_post_ra>
// kernel: tpu_custom_call.1
= control target key start
LH: loop header
LB: loop body
LE: loop exit
PB: predicated region body
PF: predicated region fallthrough
CT: control target
= control target key end

     0   :  { %s66_s6 = smov 0   ;;  %s89_s0 = inlined_call_operand.hbm [shape: f32[8,32], index: 0, kind: input, shape index: {}]   ;;  %s90_s1 = inlined_call_operand.hbm [shape: f32[8,32], index: 1, kind: output, shape index: {}]  }
   0x1 LB: > { %s47_s7 = sshll.u32 %s68_s6, 6  ;;  %s70_s14 = smov [#allocation2]   ;;  %s68_s6 = sphi %s66_s6, %s11_s6  }
   0x2   : > { %s15_s10 = scalar_lea.hbm %s89_s0, %s47_s7  ;;  %s17_s13 = scalar_lea.hbm %s90_s1, %s47_s7 }
   0x3   : > { %s71_s15 = smov 131072   ;;  %s72_s16 = smov 0  }
   0x4   : > { %24 = dma.general %s15_s10, 64, %s17_s13, %s70_s14, %s71_s15, [#allocation4], %s72_s16, 0  }
   0x5   : > { %64 = dma.done.wait [#allocation2], 64 }
   0x6   : > { %65 = vsyncadd [#allocation2], 4294967232  ;;  %s11_s6 = sadd.s32 1, %s68_s6  }
   0x7   : > { %p8_p0 = scmp.ge.s32.totalorder %s11_s6, 2  }
   0x9   :  { %10 = sbr.rel (!%p8_p0) target bundleno = 1 (0x1), region = 21 }
   0xe   :  { %28 = vsyncmov [#allocation2] }
  0x11   :  { %s29_s17 = vpop.sfrf %28 }
  0x12   :  { %p46_p1 = scmp.ne.s32.totalorder %s29_s17, 0 }
  0x14   :  { %33 = shalt.err (%p46_p1)  }

</bundles_post_ra>
